<compile_context>
chip_gen: v6e
topology: v6e:2x2x1
jax: 0.10.0
libtpu: 0.0.40
codegen_flags: <defaults>
</compile_context>

<pallas_src>
import functools

import jax
import jax.numpy as jnp
import numpy as np
from jax import lax
from jax.experimental import pallas as pl
from jax.experimental.pallas import tpu as pltpu

# Sobel kernels from the module __init__ (deterministic constants, used by the
# pure-JAX reference below).
_SOBEL_X = np.array([[-0.25, 0.0, 0.25],
                     [-0.50, 0.0, 0.50],
                     [-0.25, 0.0, 0.25]], dtype=np.float32)
_SOBEL_Y = np.array([[-0.25, -0.50, -0.25],
                     [ 0.00,  0.00,  0.00],
                     [ 0.25,  0.50,  0.25]], dtype=np.float32)


def _grad_reg_kernel(xc_ref, xt_ref, xb_ref, out_ref, *, H, W, TH, H_pad, W_pad):
    """One (TH, W_pad) row-tile of one image: partial sum of 4*|grad| into (8, W_pad)."""
    p = pl.program_id(1)
    t = pl.program_id(2)
    tile = p * pl.num_programs(2) + t                     # global row-tile index
    n_tiles = pl.num_programs(1) * pl.num_programs(2)

    xc = xc_ref[...].astype(jnp.float32)                  # (TH, W_pad), cast on load

    # Row neighbours across tile boundaries; replicate at the true image edges.
    prev_row = jnp.where(tile == 0, xc[0:1, :],
                         xt_ref[7:8, :].astype(jnp.float32))            # (1, W_pad)
    next_row = jnp.where(tile == n_tiles - 1, xc[TH - 1:TH, :],
                         xb_ref[0:1, :].astype(jnp.float32))            # (1, W_pad)

    # Narrow edge masks: one (TH,1) sublane iota + one (1,W_pad) lane iota,
    # computed once and broadcast into the selects (no full-tile int32 temps).
    row_ids = lax.broadcasted_iota(jnp.int32, (TH, 1), 0)
    col_ids = lax.broadcasted_iota(jnp.int32, (1, W_pad), 1)
    is_row0 = row_ids == 0
    is_rowN = row_ids == TH - 1
    is_col0 = col_ids == 0
    is_colN = col_ids == W_pad - 1

    # x[i-1, j] / x[i+1, j] via non-negative sublane rolls (XLU) + edge-row fix.
    x_up = jnp.where(is_row0, prev_row, pltpu.roll(xc, 1, axis=0))
    x_dn = jnp.where(is_rowN, next_row, pltpu.roll(xc, TH - 1, axis=0))

    # Separable Sobel with the 0.25 scale folded out:
    #   4*G_x = sv[:, j+1] - sv[:, j-1],        sv = x_up + 2*x + x_dn
    #   4*G_y = dv[:, j-1] + 2*dv + dv[:, j+1], dv = x_dn - x_up
    sv = x_up + 2.0 * xc + x_dn
    dv = x_dn - x_up

    def left(a):   # a[:, j-1] with replicate at the left image edge
        return jnp.where(is_col0, a, pltpu.roll(a, 1, axis=1))

    def right(a):  # a[:, j+1] with replicate at the right (padded) edge
        return jnp.where(is_colN, a, pltpu.roll(a, W_pad - 1, axis=1))

    dx = right(sv) - left(sv)                    # 4 * G_x
    dy = left(dv) + 2.0 * dv + right(dv)         # 4 * G_y

    # 4 * magnitude; eps scaled by 16 so 0.25 * mag4 == sqrt(Gx^2 + Gy^2 + 1e-9).
    # (abs() dropped: sqrt output is already nonnegative.)
    mag4 = jnp.sqrt(dx * dx + dy * dy + 1.6e-8)

    # Zero out replicate-padded rows / columns (statically omitted when no padding).
    if W_pad > W and H_pad > H:
        valid = jnp.logical_and(col_ids < W, tile * TH + row_ids < H)
        mag4 = jnp.where(valid, mag4, 0.0)
    elif W_pad > W:
        mag4 = jnp.where(col_ids < W, mag4, 0.0)
    elif H_pad > H:
        mag4 = jnp.where(tile * TH + row_ids < H, mag4, 0.0)

    # Lane-parallel partial sum: collapse rows in aligned groups of 8 (pure VALU
    # adds; the expensive cross-lane reduction happens once in the wrapper).
    partial = mag4[0:8, :]
    for s in range(1, TH // 8):
        partial = partial + mag4[s * 8:(s + 1) * 8, :]

    @pl.when(t == 0)
    def _():
        out_ref[...] = partial

    @pl.when(t != 0)
    def _():
        out_ref[...] += partial


def _round_up(x, m):
    return (x + m - 1) // m * m


def _plan_tiles(H, W_pad, min_tiles, max_block_bytes=1 << 20):
    """Rows-per-tile (multiple of 8) under a ~1 MiB f32 centre-block budget.

    Keeps ~10 full-tile f32 intermediates + double-buffered inputs comfortably
    under the 32 MiB scoped-VMEM limit (safe on v5e/v6e/v7x).
    """
    max_rows = max(8, (max_block_bytes // (W_pad * 4)) // 8 * 8)
    T = max(min_tiles, -(-H // max_rows))          # number of row tiles
    T = -(-T // min_tiles) * min_tiles             # multiple of min_tiles
    TH = _round_up(-(-H // T), 8)                  # rows per tile
    return TH, T


def gradient_regularizer(x, weight=0.01):
    """Pallas equivalent of GradientRegularizer.forward(x, epoch, step, weight).

    `epoch` / `step` are unused by the PyTorch forward and are omitted.
    """
    # TODO(synk): FourierDenoiser(threshold=25) (FFT-domain denoise) is not defined
    # in the provided module and has no clean Pallas TPU equivalent; treated as identity.
    B, H, W = x.shape
    if not jnp.issubdtype(x.dtype, jnp.floating):
        x = x.astype(jnp.float32)

    W_pad = _round_up(W, 128)                      # lane-dense width
    min_tiles = 2 if (B % 2 == 1) else 1           # extra parallel factor for v7x dual-TC
    TH, T = _plan_tiles(H, W_pad, min_tiles)
    H_pad = TH * T
    P = 2 if (B % 2 == 1 and T % 2 == 0) else 1
    Tin = T // P

    if H_pad != H or W_pad != W:
        # Replicate-pad so the right/down neighbours of the true last row/col are
        # already correct; padded cells are masked out of the sum in-kernel.
        x = jnp.pad(x, ((0, 0), (0, H_pad - H), (0, W_pad - W)), mode="edge")

    S = TH // 8                                    # 8-row strip blocks per tile
    NSTRIP = H_pad // 8                            # total 8-row strip blocks

    kernel = functools.partial(_grad_reg_kernel, H=H, W=W, TH=TH,
                               H_pad=H_pad, W_pad=W_pad)

    partials = pl.pallas_call(
        kernel,
        out_shape=jax.ShapeDtypeStruct((B, P, 8, W_pad), jnp.float32),
        grid=(B, P, Tin),
        in_specs=[
            # Centre row-tile of image b.
            pl.BlockSpec((None, TH, W_pad),
                         lambda b, p, t: (b, p * Tin + t, 0)),
            # 8-row strip just above the tile (clamped at the top edge).
            pl.BlockSpec((None, 8, W_pad),
                         lambda b, p, t: (b, jnp.maximum((p * Tin + t) * S - 1, 0), 0)),
            # 8-row strip just below the tile (clamped at the bottom edge).
            pl.BlockSpec((None, 8, W_pad),
                         lambda b, p, t: (b, jnp.minimum((p * Tin + t + 1) * S,
                                                         NSTRIP - 1), 0)),
        ],
        # Lane-dense per-(batch, split) accumulator, resident across the row-tile axis.
        out_specs=pl.BlockSpec((None, None, 8, W_pad), lambda b, p, t: (b, p, 0, 0)),
        compiler_params=pltpu.CompilerParams(
            dimension_semantics=("parallel", "parallel", "arbitrary"),
            vmem_limit_bytes=32 * 1024 * 1024),
    )(x, x, x)

    # Tiny scalar epilogue (keeps batch/split axes "parallel"): fold the 0.25
    # Sobel scale, take the mean over the TRUE extent, clamp, scale by weight.
    total = jnp.sum(partials)
    mean_mag = 0.25 * total / float(B * H * W)
    val = jnp.clip(1.0 - mean_mag, 0.0, 1.0)       # pow(., 1) is identity
    return val * weight


def _reference(x, weight=0.01):
    """Pure-JAX reference matching the PyTorch forward (denoiser = identity)."""
    x = x.astype(jnp.float32)
    xp = jnp.pad(x, ((0, 0), (1, 1), (1, 1)), mode="edge")
    B, Hp, Wp = xp.shape
    H, W = Hp - 2, Wp - 2
    gx = jnp.zeros((B, H, W), jnp.float32)
    gy = jnp.zeros((B, H, W), jnp.float32)
    for di in range(3):
        for dj in range(3):
            win = xp[:, di:di + H, dj:dj + W]
            gx = gx + float(_SOBEL_X[di, dj]) * win
            gy = gy + float(_SOBEL_Y[di, dj]) * win
    mag = jnp.sqrt(gx * gx + gy * gy + 1e-9)
    return jnp.clip(1.0 - jnp.mean(jnp.abs(mag)), 0.0, 1.0) * weight


if __name__ == "__main__":
    key = jax.random.PRNGKey(0)

    # (B, H, W) grayscale image batch, lane-dense width, H multiple of 8.
    x = jax.random.uniform(key, (2, 32, 128), dtype=jnp.float32)
    out = jax.block_until_ready(gradient_regularizer(x, weight=0.01))
    ref = jax.block_until_ready(_reference(x, weight=0.01))
    np.testing.assert_allclose(np.asarray(out), np.asarray(ref), atol=1e-5, rtol=1e-5)

    # Awkward shape + batch 1: exercises replicate padding / masking and the extra
    # "parallel" row-split axis (v7x dual-TensorCore path).
    x2 = jax.random.uniform(jax.random.PRNGKey(0), (1, 30, 100), dtype=jnp.float32)
    out2 = jax.block_until_ready(gradient_regularizer(x2, weight=0.01))
    ref2 = jax.block_until_ready(_reference(x2, weight=0.01))
    np.testing.assert_allclose(np.asarray(out2), np.asarray(ref2), atol=1e-5, rtol=1e-5)

    print("KERNEL_OK")
</pallas_src>

<mosaic_0001>
module attributes {stable_mosaic.version = 11 : i64} {
  func.func @_grad_reg_kernel(%arg0: i32, %arg1: i32, %arg2: i32, %arg3: memref<1x32x128xf32, #tpu.memory_space<vmem>>, %arg4: memref<1x8x128xf32, #tpu.memory_space<vmem>>, %arg5: memref<1x8x128xf32, #tpu.memory_space<vmem>>, %arg6: memref<1x1x8x128xf32, #tpu.memory_space<vmem>>) attributes {dimension_semantics = [#tpu.dimension_semantics<parallel>, #tpu.dimension_semantics<parallel>, #tpu.dimension_semantics<arbitrary>], iteration_bounds = array<i64: 2, 1, 1>, scalar_prefetch = 0 : i64, scratch_operands = 0 : i64, tpu.core_type = #tpu.core_type<tc>, window_params = [{transform_indices = @transform_0, window_bounds = array<i64: 1, 32, 128>}, {transform_indices = @transform_1, window_bounds = array<i64: 1, 8, 128>}, {transform_indices = @transform_2, window_bounds = array<i64: 1, 8, 128>}, {transform_indices = @transform_3, window_bounds = array<i64: 1, 1, 8, 128>}]} {
    %c1_i32 = arith.constant 1 : i32
    %0 = arith.muli %arg1, %c1_i32 : i32
    %1 = arith.addi %0, %arg2 : i32
    %c0 = arith.constant 0 : index
    %c0_0 = arith.constant 0 : index
    %c0_1 = arith.constant 0 : index
    %2 = vector.load %arg3[%c0, %c0_0, %c0_1] : memref<1x32x128xf32, #tpu.memory_space<vmem>>, vector<1x32x128xf32>
    %3 = vector.shape_cast %2 : vector<1x32x128xf32> to vector<32x128xf32>
    %c0_i32 = arith.constant 0 : i32
    %4 = arith.cmpi eq, %1, %c0_i32 : i32
    %5 = vector.extract_strided_slice %3 {offsets = [0, 0], sizes = [1, 128], strides = [1, 1]} : vector<32x128xf32> to vector<1x128xf32>
    %c0_2 = arith.constant 0 : index
    %c7 = arith.constant 7 : index
    %c0_3 = arith.constant 0 : index
    %6 = vector.load %arg4[%c0_2, %c7, %c0_3] : memref<1x8x128xf32, #tpu.memory_space<vmem>>, vector<1x1x128xf32>
    %7 = vector.shape_cast %6 : vector<1x1x128xf32> to vector<1x128xf32>
    %8 = arith.select %4, %5, %7 : vector<1x128xf32>
    %c0_i32_4 = arith.constant 0 : i32
    %9 = arith.cmpi eq, %1, %c0_i32_4 : i32
    %10 = vector.extract_strided_slice %3 {offsets = [31, 0], sizes = [1, 128], strides = [1, 1]} : vector<32x128xf32> to vector<1x128xf32>
    %c0_5 = arith.constant 0 : index
    %c0_6 = arith.constant 0 : index
    %c0_7 = arith.constant 0 : index
    %11 = vector.load %arg5[%c0_5, %c0_6, %c0_7] : memref<1x8x128xf32, #tpu.memory_space<vmem>>, vector<1x1x128xf32>
    %12 = vector.shape_cast %11 : vector<1x1x128xf32> to vector<1x128xf32>
    %13 = arith.select %9, %10, %12 : vector<1x128xf32>
    %14 = tpu.iota {dimensions = array<i32: 0>} : vector<32x1xi32>
    %15 = tpu.iota {dimensions = array<i32: 1>} : vector<1x128xi32>
    %c0_i32_8 = arith.constant 0 : i32
    %16 = vector.broadcast %c0_i32_8 : i32 to vector<32x1xi32>
    %17 = arith.cmpi eq, %14, %16 : vector<32x1xi32>
    %c31_i32 = arith.constant 31 : i32
    %18 = vector.broadcast %c31_i32 : i32 to vector<32x1xi32>
    %19 = arith.cmpi eq, %14, %18 : vector<32x1xi32>
    %c0_i32_9 = arith.constant 0 : i32
    %20 = vector.broadcast %c0_i32_9 : i32 to vector<1x128xi32>
    %21 = arith.cmpi eq, %15, %20 : vector<1x128xi32>
    %c127_i32 = arith.constant 127 : i32
    %22 = vector.broadcast %c127_i32 : i32 to vector<1x128xi32>
    %23 = arith.cmpi eq, %15, %22 : vector<1x128xi32>
    %c1_i32_10 = arith.constant 1 : i32
    %24 = tpu.dynamic_rotate %3 by %c1_i32_10 dim 0 : vector<32x128xf32>, i32 -> vector<32x128xf32>
    %25 = vector.shape_cast %17 : vector<32x1xi1> to vector<32x1xi1>
    %26 = vector.broadcast %25 : vector<32x1xi1> to vector<32x128xi1>
    %27 = vector.shape_cast %8 : vector<1x128xf32> to vector<1x128xf32>
    %28 = vector.broadcast %27 : vector<1x128xf32> to vector<32x128xf32>
    %29 = arith.select %26, %28, %24 : vector<32x128xi1>, vector<32x128xf32>
    %c31_i32_11 = arith.constant 31 : i32
    %30 = tpu.dynamic_rotate %3 by %c31_i32_11 dim 0 : vector<32x128xf32>, i32 -> vector<32x128xf32>
    %31 = vector.shape_cast %19 : vector<32x1xi1> to vector<32x1xi1>
    %32 = vector.broadcast %31 : vector<32x1xi1> to vector<32x128xi1>
    %33 = vector.shape_cast %13 : vector<1x128xf32> to vector<1x128xf32>
    %34 = vector.broadcast %33 : vector<1x128xf32> to vector<32x128xf32>
    %35 = arith.select %32, %34, %30 : vector<32x128xi1>, vector<32x128xf32>
    %cst = arith.constant 2.000000e+00 : f32
    %36 = vector.broadcast %cst : f32 to vector<32x128xf32>
    %37 = arith.mulf %36, %3 : vector<32x128xf32>
    %38 = arith.addf %29, %37 : vector<32x128xf32>
    %39 = arith.addf %38, %35 : vector<32x128xf32>
    %40 = arith.subf %35, %29 : vector<32x128xf32>
    %c127_i32_12 = arith.constant 127 : i32
    %41 = tpu.dynamic_rotate %39 by %c127_i32_12 dim 1 : vector<32x128xf32>, i32 -> vector<32x128xf32>
    %42 = vector.shape_cast %23 : vector<1x128xi1> to vector<1x128xi1>
    %43 = vector.broadcast %42 : vector<1x128xi1> to vector<32x128xi1>
    %44 = arith.select %43, %39, %41 : vector<32x128xi1>, vector<32x128xf32>
    %c1_i32_13 = arith.constant 1 : i32
    %45 = tpu.dynamic_rotate %39 by %c1_i32_13 dim 1 : vector<32x128xf32>, i32 -> vector<32x128xf32>
    %46 = vector.shape_cast %21 : vector<1x128xi1> to vector<1x128xi1>
    %47 = vector.broadcast %46 : vector<1x128xi1> to vector<32x128xi1>
    %48 = arith.select %47, %39, %45 : vector<32x128xi1>, vector<32x128xf32>
    %49 = arith.subf %44, %48 : vector<32x128xf32>
    %c1_i32_14 = arith.constant 1 : i32
    %50 = tpu.dynamic_rotate %40 by %c1_i32_14 dim 1 : vector<32x128xf32>, i32 -> vector<32x128xf32>
    %51 = vector.shape_cast %21 : vector<1x128xi1> to vector<1x128xi1>
    %52 = vector.broadcast %51 : vector<1x128xi1> to vector<32x128xi1>
    %53 = arith.select %52, %40, %50 : vector<32x128xi1>, vector<32x128xf32>
    %cst_15 = arith.constant 2.000000e+00 : f32
    %54 = vector.broadcast %cst_15 : f32 to vector<32x128xf32>
    %55 = arith.mulf %54, %40 : vector<32x128xf32>
    %56 = arith.addf %53, %55 : vector<32x128xf32>
    %c127_i32_16 = arith.constant 127 : i32
    %57 = tpu.dynamic_rotate %40 by %c127_i32_16 dim 1 : vector<32x128xf32>, i32 -> vector<32x128xf32>
    %58 = vector.shape_cast %23 : vector<1x128xi1> to vector<1x128xi1>
    %59 = vector.broadcast %58 : vector<1x128xi1> to vector<32x128xi1>
    %60 = arith.select %59, %40, %57 : vector<32x128xi1>, vector<32x128xf32>
    %61 = arith.addf %56, %60 : vector<32x128xf32>
    %62 = arith.mulf %49, %49 : vector<32x128xf32>
    %63 = arith.mulf %61, %61 : vector<32x128xf32>
    %64 = arith.addf %62, %63 : vector<32x128xf32>
    %cst_17 = arith.constant 1.600000e-08 : f32
    %65 = vector.broadcast %cst_17 : f32 to vector<32x128xf32>
    %66 = arith.addf %64, %65 : vector<32x128xf32>
    %67 = math.sqrt %66 : vector<32x128xf32>
    %68 = vector.extract_strided_slice %67 {offsets = [0, 0], sizes = [8, 128], strides = [1, 1]} : vector<32x128xf32> to vector<8x128xf32>
    %69 = vector.extract_strided_slice %67 {offsets = [8, 0], sizes = [8, 128], strides = [1, 1]} : vector<32x128xf32> to vector<8x128xf32>
    %70 = arith.addf %68, %69 : vector<8x128xf32>
    %71 = vector.extract_strided_slice %67 {offsets = [16, 0], sizes = [8, 128], strides = [1, 1]} : vector<32x128xf32> to vector<8x128xf32>
    %72 = arith.addf %70, %71 : vector<8x128xf32>
    %73 = vector.extract_strided_slice %67 {offsets = [24, 0], sizes = [8, 128], strides = [1, 1]} : vector<32x128xf32> to vector<8x128xf32>
    %74 = arith.addf %72, %73 : vector<8x128xf32>
    %c0_i32_18 = arith.constant 0 : i32
    %75 = arith.cmpi eq, %arg2, %c0_i32_18 : i32
    %76 = arith.extui %75 : i1 to i32
    %c0_i32_19 = arith.constant 0 : i32
    %77 = arith.cmpi ne, %76, %c0_i32_19 : i32
    scf.if %77 {
      %c0_22 = arith.constant 0 : index
      %c0_23 = arith.constant 0 : index
      %c0_24 = arith.constant 0 : index
      %c0_25 = arith.constant 0 : index
      %81 = vector.load %arg6[%c0_22, %c0_23, %c0_24, %c0_25] : memref<1x1x8x128xf32, #tpu.memory_space<vmem>>, vector<1x1x8x128xf32>
      %82 = vector.shape_cast %81 : vector<1x1x8x128xf32> to vector<8x128xf32>
      %83 = vector.shape_cast %74 : vector<8x128xf32> to vector<1x1x8x128xf32>
      tpu.vector_store %arg6[%c0_22, %c0_23, %c0_24, %c0_25], %83 {strides = array<i32>} : memref<1x1x8x128xf32, #tpu.memory_space<vmem>>, vector<1x1x8x128xf32>,
    } else {
    }
    %c0_i32_20 = arith.constant 0 : i32
    %78 = arith.cmpi ne, %arg2, %c0_i32_20 : i32
    %79 = arith.extui %78 : i1 to i32
    %c0_i32_21 = arith.constant 0 : i32
    %80 = arith.cmpi ne, %79, %c0_i32_21 : i32
    scf.if %80 {
      %c0_22 = arith.constant 0 : index
      %c0_23 = arith.constant 0 : index
      %c0_24 = arith.constant 0 : index
      %c0_25 = arith.constant 0 : index
      %81 = vector.load %arg6[%c0_22, %c0_23, %c0_24, %c0_25] : memref<1x1x8x128xf32, #tpu.memory_space<vmem>>, vector<1x1x8x128xf32>
      %82 = vector.shape_cast %81 : vector<1x1x8x128xf32> to vector<8x128xf32>
      %83 = arith.addf %82, %74 : vector<8x128xf32>
      %c0_26 = arith.constant 0 : index
      %c0_27 = arith.constant 0 : index
      %c0_28 = arith.constant 0 : index
      %c0_29 = arith.constant 0 : index
      %84 = vector.load %arg6[%c0_26, %c0_27, %c0_28, %c0_29] : memref<1x1x8x128xf32, #tpu.memory_space<vmem>>, vector<1x1x8x128xf32>
      %85 = vector.shape_cast %84 : vector<1x1x8x128xf32> to vector<8x128xf32>
      %86 = vector.shape_cast %83 : vector<8x128xf32> to vector<1x1x8x128xf32>
      tpu.vector_store %arg6[%c0_26, %c0_27, %c0_28, %c0_29], %86 {strides = array<i32>} : memref<1x1x8x128xf32, #tpu.memory_space<vmem>>, vector<1x1x8x128xf32>,
    } else {
    }
    return
  }
  func.func @transform_0(%arg0: i32, %arg1: i32, %arg2: i32) -> (i32, i32, i32) {
    %c1_i32 = arith.constant 1 : i32
    %0 = arith.muli %arg1, %c1_i32 : i32
    %1 = arith.addi %0, %arg2 : i32
    %c0_i32 = arith.constant 0 : i32
    %c0_i32_0 = arith.constant 0 : i32
    return %arg0, %1, %c0_i32 : i32, i32, i32
  }
  func.func @transform_1(%arg0: i32, %arg1: i32, %arg2: i32) -> (i32, i32, i32) {
    %c1_i32 = arith.constant 1 : i32
    %0 = arith.muli %arg1, %c1_i32 : i32
    %1 = arith.addi %0, %arg2 : i32
    %c4_i32 = arith.constant 4 : i32
    %2 = arith.muli %1, %c4_i32 : i32
    %c1_i32_0 = arith.constant 1 : i32
    %3 = arith.subi %2, %c1_i32_0 : i32
    %c0_i32 = arith.constant 0 : i32
    %4 = arith.maxsi %3, %c0_i32 : i32
    %c0_i32_1 = arith.constant 0 : i32
    %c0_i32_2 = arith.constant 0 : i32
    return %arg0, %4, %c0_i32_1 : i32, i32, i32
  }
  func.func @transform_2(%arg0: i32, %arg1: i32, %arg2: i32) -> (i32, i32, i32) {
    %c1_i32 = arith.constant 1 : i32
    %0 = arith.muli %arg1, %c1_i32 : i32
    %1 = arith.addi %0, %arg2 : i32
    %c1_i32_0 = arith.constant 1 : i32
    %2 = arith.addi %1, %c1_i32_0 : i32
    %c4_i32 = arith.constant 4 : i32
    %3 = arith.muli %2, %c4_i32 : i32
    %c3_i32 = arith.constant 3 : i32
    %4 = arith.minsi %3, %c3_i32 : i32
    %c0_i32 = arith.constant 0 : i32
    %c0_i32_1 = arith.constant 0 : i32
    return %arg0, %4, %c0_i32 : i32, i32, i32
  }
  func.func @transform_3(%arg0: i32, %arg1: i32, %arg2: i32) -> (i32, i32, i32, i32) {
    %c0_i32 = arith.constant 0 : i32
    %c0_i32_0 = arith.constant 0 : i32
    %c0_i32_1 = arith.constant 0 : i32
    return %arg0, %arg1, %c0_i32, %c0_i32_0 : i32, i32, i32, i32
  }
}

</mosaic_0001>

<bundles_post_ra>
// kernel: tpu_custom_call.1
= control target key start
LH: loop header
LB: loop body
LE: loop exit
PB: predicated region body
PF: predicated region fallthrough
CT: control target
= control target key end

     0   :  { %s1290_s0 = inlined_call_operand.hbm [shape: f32[2,32,128], index: 0, kind: input, shape index: {}]   ;;  %s1291_s1 = inlined_call_operand.hbm [shape: f32[2,32,128], index: 1, kind: input, shape index: {}]   ;;  %s1292_s2 = inlined_call_operand.hbm [shape: f32[2,32,128], index: 2, kind: input, shape index: {}]   ;;  %s1293_s3 = inlined_call_operand.hbm [shape: f32[2,1,8,128], index: 3, kind: output, shape index: {}]  }
   0x1   :  { %1297 = sst [smem:[#allocation15_spill]] %s1291_s1 }
   0x2   :  { %1298 = sst [smem:[#allocation16_spill]] %s1292_s2 }
   0x3   :  { %8 = vsyncpa [#allocation3], 0 }
   0x4   :  { %10 = vsyncpa [#allocation3 + $0x1], 0 }
   0x5   :  { %11 = vsyncpa [#allocation6], 0 }
   0x6   :  { %13 = vsyncpa [#allocation6 + $0x1], 0 }
   0x7   :  { %14 = vsyncpa [#allocation4], 0 }
   0x8   :  { %16 = vsyncpa [#allocation4 + $0x1], 0  ;;  %s1021_s12 = smov 0   ;;  %s1023_s13 = smov 0  }
   0x9   :  { %s1025_s14 = smov 0   ;;  %s1027_s15 = smov 0  }
   0xa   :  { %s1029_s16 = smov 0   ;;  %s1031_s17 = smov 0  }
   0xb LB: > { %1299 = sst [smem:[#allocation12_spill]] %s987_s16  ;;  %s1052_s18 = sadd.s32 4294967295, %s991_s17   ;;  %s991_s17 = sphi %s1031_s17, %s22_s17   ;;  %s987_s16 = sphi %s1029_s16, %s1315_s16   ;;  %s983_s15 = sphi %s1027_s15, %s1314_s15   ;;  %s979_s14 = sphi %s1025_s14, %s1318_s14   ;;  %s975_s13 = sphi %s1023_s13, %s1317_s13   ;;  %s971_s12 = sphi %s1021_s12, %s1316_s12  }
   0xc   : > { %s713_s19 = sadd.s32 4294967294, %s991_s17   ;;  %s41_s20 = sadd.s32 1, %s987_s16 }
   0xd   : > { %s52_s21 = sadd.s32 1, %s979_s14  ;;  %p43_p0 = scmp.ge.s32.totalorder %s41_s20, 2 }
   0xe   : > { %p59_p1 = scmp.ne.s32.totalorder %s979_s14, %s975_s13  ;;  %p60_p2 = scmp.eq.s32.totalorder %s991_s17, 0 }
   0xf   : > { %p65_p3 = scmp.ne.s32.totalorder %s975_s13, %s971_s12  ;;  %s1320_s20 = smov (%p43_p0, %s41_s20), 0 }
  0x10   : > { %1300 = sst [smem:[#allocation13_spill]] %s1320_s20  ;;  %p1064_p4 = por %p60_p2, %p59_p1 }
  0x11   : > { %p66_p5 = scmp.eq.s32.totalorder %s1052_s18, 0  ;;  %s47_s23 = ssub.s32 %s987_s16, %s1320_s20 }
  0x12   : > { %p167_p6 = scmp.eq.s32.totalorder %s1052_s18, 1  ;;  %p50_p7 = scmp.eq.s32.totalorder %s47_s23, 0 }
  0x13   : > { %p1072_p8 = por %p66_p5, %p65_p3  ;;  %p173_p10 = scmp.eq.s32.totalorder %s713_s19, 1 }
  0x14   : > { %p1076_p9 = por %p167_p6, %p59_p1  ;;  %p761_p13 = scmp.lt.s32.totalorder %s991_s17, 2 }
  0x15   : > { %s1081_s26 = scalar_select %p50_p7, %s979_s14, %s52_s21  }
  0x16   : > { %p1083_p11 = por %p173_p10, %p65_p3  ;;  %s1090_s28 = sand.u32 1, %s979_s14  }
  0x17   : > { %1304 = sst [smem:[#allocation14_spill]] %s1081_s26  ;;  %s1093_s29 = sshll.u32 %s987_s16, 9 }
  0x18   : > { %s217_s30 = sand.u32 1, %s991_s17   ;;  %p1102_p0 = pnand %p761_p13, %p1064_p4 }
  0x19   : > { %s1294_s8 = sshll.u32 %s1090_s28, 3  ;;  %s1307_s1 = sld [smem:[#allocation15_spill]] }
  0x1a   : > { %s221_s19 = scalar_lea.vmem [#allocation5], %s1294_s8  ;;  %s1113_s23 = scalar_lea.sflag [#allocation6], %s217_s30 }
  0x1b   : > { %s235_s21 = sshll.u32 %s221_s19, 4  ;;  %p825_p1 = pneg %p1102_p0  ;;  %s236_s21 = int_to_ptr.vmem [resolvable:$true] %s235_s21 }
  0x1c   : > { %s836_s22 = scalar_lea.vmem %s236_s21, 128  ;;  %s993_s4 = smov [#allocation5]  }
  0x1d   : > { %p837_p2 = scmp.ne.s32.totalorder %s236_s21, %s836_s22  ;;  %s841_s5 = sshll.u32 %s993_s4, 4  ;;  %s842_s5 = int_to_ptr.vmem [resolvable:$false] %s841_s5 }
  0x1e   : > { %s843_s6 = scalar_lea.vmem %s842_s5, 256  ;;  %p844_p5 = scmp.lt.s32.totalorder %s236_s21, %s842_s5 }
  0x1f   : > { %s233_s11 = scalar_lea.hbm %s1307_s1, %s1093_s29  ;;  %p839_p3 = pnand %p837_p2, %p825_p1 }
  0x20   : > { %p845_p6 = scmp.lt.s32.totalorder %s843_s6, %s836_s22 }
  0x21   : > { %p840_p4 = pneg %p839_p3 }
  0x22   : > { %p846_p7 = por %p845_p6, %p844_p5 }
  0x24   : > { %p847_p10 = pnand %p846_p7, %p840_p4 }
  0x26   : > { %850 = shalt.err (!%p847_p10)
}
  0x27   : > { %753 = dma.hbm_to_vmem [thread:$0]  (!%p1102_p0), %s233_s11, 128, %s236_s21, %s1113_s23  }
  0x28   : > { %p725_p13 = scmp.ge.s32.totalorder %s991_s17, 1  ;;  %p265_p2 = scmp.lt.s32.totalorder %s991_s17, 3 }
  0x29   : > { %s716_s6 = sshll.u32 %s1090_s28, 5  ;;  %s737_s19 = sadd.s32 384, %s1093_s29 }
  0x2a   : > { %p1125_p3 = pnand %p725_p13, %p265_p2  ;;  %s197_s9 = scalar_lea.vmem [#allocation2], %s716_s6 }
  0x2b   : > { %s207_s10 = sshll.u32 %s197_s9, 4  ;;  %s1309_s2 = sld [smem:[#allocation16_spill]]  ;;  %s208_s10 = int_to_ptr.vmem [resolvable:$true] %s207_s10 }
  0x2c   : > { %s194_s8 = scalar_lea.sflag [#allocation3], %s1090_s28  ;;  %s864_s1 = scalar_lea.vmem %s208_s10, 512 }
  0x2d   : > { %p865_p4 = scmp.ne.s32.totalorder %s208_s10, %s864_s1  ;;  %s994_s11 = smov [#allocation2]  }
  0x2e   : > { %s869_s21 = sshll.u32 %s994_s11, 4  ;;  %s870_s21 = int_to_ptr.vmem [resolvable:$false] %s869_s21 }
  0x2f   : > { %p867_p5 = pnand %p865_p4, %p825_p1  ;;  %s871_s20 = scalar_lea.vmem %s870_s21, 1024 }
  0x30   : > { %p872_p7 = scmp.lt.s32.totalorder %s208_s10, %s870_s21  ;;  %p873_p10 = scmp.lt.s32.totalorder %s871_s20, %s864_s1 }
  0x31   : > { %s1134_s5 = scalar_lea.hbm %s1309_s2, %s737_s19  ;;  %p868_p6 = pneg %p867_p5 }
  0x32   : > { %p874_p13 = por %p873_p10, %p872_p7 }
  0x34   : > { %p875_p2 = pnand %p874_p13, %p868_p6 }
  0x36   : > { %878 = shalt.err (!%p875_p2)
}
  0x37   : > { %s995_s6 = smov 128   ;;  %s996_s9 = smov 8  }
  0x38   : > { %s1310_s4 = scalar_lea.hbm %s1290_s0, %s1093_s29  ;;  %s1311_s11 = sshll.u32 %s1090_s28, 3 }
  0x39   : > { %750 = dma.hbm_to_vmem [thread:$0]  (!%p1102_p0), %s1310_s4, 512, %s208_s10, %s194_s8, %s995_s6, %s995_s6, %s996_s9  }
  0x3a   : > { %s246_s2 = scalar_lea.vmem [#allocation7], %s1311_s11  ;;  %s997_s20 = smov [#allocation7]  }
  0x3b   : > { %s260_s16 = sshll.u32 %s246_s2, 4  ;;  %s897_s21 = sshll.u32 %s997_s20, 4  ;;  %s261_s16 = int_to_ptr.vmem [resolvable:$true] %s260_s16  ;;  %s898_s21 = int_to_ptr.vmem [resolvable:$false] %s897_s21 }
  0x3c   : > { %s892_s1 = scalar_lea.vmem %s261_s16, 128  ;;  %s899_s26 = scalar_lea.vmem %s898_s21, 256 }
  0x3d   : > { %p893_p4 = scmp.ne.s32.totalorder %s261_s16, %s892_s1  ;;  %p900_p7 = scmp.lt.s32.totalorder %s261_s16, %s898_s21 }
  0x3e   : > { %p901_p10 = scmp.lt.s32.totalorder %s899_s26, %s892_s1 }
  0x3f   : > { %p895_p5 = pnand %p893_p4, %p825_p1 }
  0x40   : > { %p902_p13 = por %p901_p10, %p900_p7 }
  0x41   : > { %p896_p6 = pneg %p895_p5 }
  0x43   : > { %p903_p2 = pnand %p902_p13, %p896_p6 }
  0x45   : > { %906 = shalt.err (!%p903_p2)
}
  0x46   : > { %756 = dma.hbm_to_vmem [thread:$0]  (!%p1102_p0), %s1134_s5, 128, %s261_s16, %s1113_s23  }
  0x47   : > { %269 = sbr.rel (%p1125_p3) target bundleno = 276 (0x114), region = 32  ;;  %s1159_s2 = sand.u32 (!%p1125_p3), 1, %s975_s13  }
  0x48   : > { %s726_s28 = sshll.u32 (!%p1125_p3), %s1159_s2, 5  ;;  %s272_s29 = scalar_lea.sflag (!%p1125_p3), [#allocation3], %s1159_s2 }
  0x49   : > { %s275_s26 = scalar_lea.vmem (!%p1125_p3), [#allocation2], %s726_s28 }
  0x4c   : > { %958 = dma.done.wait (%p1072_p8), %s272_s29, 512  }
  0x4d   : > { %960 = vsyncadd (%p1072_p8), %s272_s29, 4294966784  ;;  %s280_s16 = sand.u32 1, %s1052_s18  }
  0x4e   : > { %s281_s7 = scalar_lea.sflag [#allocation6], %s280_s16 }
  0x4f   : > { %962 = dma.done.wait (%p1072_p8), %s281_s7, 256  }
  0x50   : > { %964 = vsyncadd (%p1072_p8), %s281_s7, 4294967040  ;;  %v354_v0 = vlaneseq  ;;  %v339_v3 = vld [vmem:[%s275_s26] sm:$0xff]  ;;  %v340_v4 = vld [vmem:[%s275_s26 + $0x8] sm:$0xff]  ;;  %s998_s18 = smov 1   ;;  %s999_s24 = smov 127  }
  0x51   : > { %v341_v5 = vld [vmem:[%s275_s26 + $0x10] sm:$0xff]  ;;  %v371_v6 = vrot.slane %v339_v3, 7  ;;  %v372_v7 = vrot.slane %v340_v4, 7  ;;  %v397_v8 = vrot.slane %v340_v4, 1  ;;  %v342_v10 = vld [vmem:[%s275_s26 + $0x18] sm:$0xff]  ;;  %v396_v13 = vrot.slane %v339_v3, 1 }
  0x52   : > { %v355_v1 = vshrl.u32 %v354_v0, 7  ;;  %v398_v9 = vrot.slane %v341_v5, 1  ;;  %v374_v11 = vrot.slane %v342_v10, 7  ;;  %v373_v14 = vrot.slane %v341_v5, 7  ;;  %s729_s8 = sshll.u32 %s1159_s2, 3  ;;  %s731_s23 = sshll.u32 %s983_s15, 7 }
  0x53   : > { %v399_v17 = vrot.slane %v342_v10, 1  ;;  %v422_v18 = vmul.f32 2.0, %v340_v4  ;;  %v423_v29 = vmul.f32 2.0, %v341_v5  ;;  %v421_v30 = vmul.f32 2.0, %v339_v3  ;;  %s325_s30 = scalar_lea.vmem [#allocation8], %s729_s8  ;;  %s577_s9 = scalar_lea.hbm %s1293_s3, %s731_s23 }
  0x54   : > { %v390_v2 = vsub.s32 0, %v355_v1  ;;  %vm375_vm0 = vcmp.lt.s32.totalorder %v355_v1, 1  ;;  %vm400_vm1 = vcmp.lt.s32.totalorder %v355_v1, 7  ;;  %vm361_vm2 = vcmp.eq.s32.totalorder %v355_v1, 0  ;;  %s579_s10 = sshll.u32 %s325_s30, 4  ;;  %s565_s19 = scalar_lea.sflag [#allocation4], %s1159_s2  ;;  %s580_s10 = int_to_ptr.vmem [resolvable:$true] %s579_s10 }
  0x55   : > { %v378_v15 = vsel %vm375_vm0, %v371_v6, %v372_v7  ;;  %v402_v16 = vsel %vm400_vm1, %v397_v8, %v398_v9  ;;  %v379_v20 = vsel %vm375_vm0, %v374_v11, %v371_v6  ;;  %v403_v21 = vsel %vm400_vm1, %v396_v13, %v397_v8  ;;  %s907_s22 = scalar_lea.vmem %s580_s10, 128  ;;  %s1000_s15 = smov [#allocation8]  }
  0x56   : > { %v391_v12 = vrot.slane %v339_v3, %v390_v2  ;;  %v434_v19 = vsub.f32 %v402_v16, %v378_v15  ;;  %v377_v22 = vsel %vm375_vm0, %v372_v7, %v373_v14  ;;  %v401_v24 = vsel %vm400_vm1, %v398_v9, %v399_v17  ;;  %p908_p8 = scmp.ne.s32.totalorder %s580_s10, %s907_s22  ;;  %s911_s4 = sshll.u32 %s1000_s15, 4  ;;  %s912_s4 = int_to_ptr.vmem [resolvable:$false] %s911_s4 }
  0x57   : > { %v426_v25 = vadd.f32 %v422_v18, %v378_v15  ;;  %v1181_v27 = vsub.f32 %v401_v24, %v377_v22  ;;  %v427_v31 = vadd.f32 %v423_v29, %v377_v22  ;;  %v415_v32 = vsub.s32 7, %v355_v1  ;;  %s913_s11 = scalar_lea.vmem %s912_s4, 256  ;;  %p914_p3 = scmp.lt.s32.totalorder %s580_s10, %s912_s4 }
  0x58   : > { %v392_v23 = vsel %vm361_vm2, %v391_v12, %v379_v20  ;;  %471 = vrot.lane.b32.xlu0 %v434_v19, %s998_s18  ;;  %v358_v34 = vadd.s32 24, %v355_v1  ;;  %v404_v38 = vsel %vm400_vm1, %v399_v17, %v396_v13  ;;  %v424_v39 = vmul.f32 2.0, %v342_v10  ;;  %p909_p0 = pnand %p908_p8, %p1076_p9  ;;  %p915_p4 = scmp.lt.s32.totalorder %s913_s11, %s907_s22 }
  0x59   : > { %v433_v26 = vsub.f32 %v403_v21, %v392_v23  ;;  %v430_v28 = vadd.f32 %v426_v25, %v402_v16  ;;  %v425_v33 = vadd.f32 %v421_v30, %v392_v23  ;;  %v431_v35 = vadd.f32 %v427_v31, %v401_v24 }
  0x5a   : > { %v416_v36 = vrot.slane %v342_v10, %v415_v32  ;;  %vm368_vm3 = vcmp.eq.s32.totalorder %v358_v34, 31  ;;  %v376_v40 = vsel %vm375_vm0, %v373_v14, %v374_v11  ;;  %v1207_v46 = vand.u32 127, %v354_v0  ;;  %p910_p1 = pneg %p909_p0  ;;  %p916_p5 = por %p915_p4, %p914_p3 }
  0x5b   : > { %489 = vrot.lane.b32.xlu1 %v433_v26, %s999_s24  ;;  %v429_v37 = vadd.f32 %v425_v33, %v403_v21  ;;  %v428_v43 = vadd.f32 %v424_v39, %v376_v40  ;;  %v482_v50 = vmul.f32 2.0, %v434_v19  ;;  %v481_v54 = vmul.f32 2.0, %v433_v26 }
  0x5c   : > { %473 = vrot.lane.b32.xlu0 %v1181_v27, %s998_s18  ;;  %v420_v41 = vsel %vm368_vm3, %v416_v36, %v404_v38  ;;  %vm369_vm4 = vcmp.eq.s32.totalorder %v1207_v46, 0  ;;  %vm370_vm5 = vcmp.eq.s32.totalorder %v1207_v46, 127  ;;  %v483_v9 = vmul.f32 2.0, %v1181_v27  ;;  %p917_p6 = pnand %p916_p5, %p910_p1 }
  0x5d   : > { %v1195_v42 = vsub.f32 %v420_v41, %v376_v40  ;;  %v432_v44 = vadd.f32 %v428_v43, %v420_v41 }
  0x5f   : > { %439 = vrot.lane.b32.xlu1 %v430_v28, %s999_s24 }
  0x60   : > { %491 = vrot.lane.b32.xlu0 %v434_v19, %s999_s24 }
  0x63   : > { %453 = vrot.lane.b32.xlu1 %v430_v28, %s998_s18 }
  0x64   : > { %469 = vrot.lane.b32.xlu0 %v433_v26, %s998_s18 }
  0x67   : > { %441 = vrot.lane.b32.xlu1 %v431_v35, %s999_s24 }
  0x68   : > { %451 = vrot.lane.b32.xlu0 %v429_v37, %s998_s18 }
  0x6b   : > { %437 = vrot.lane.b32.xlu1 %v429_v37, %s999_s24 }
  0x6c   : > { %455 = vrot.lane.b32.xlu0 %v431_v35, %s998_s18 }
  0x6f   : > { %475 = vrot.lane.b32.xlu1 %v1195_v42, %s998_s18 }
  0x70   : > { %493 = vrot.lane.b32.xlu0 %v1181_v27, %s999_s24 }
  0x73   : > { %443 = vrot.lane.b32.xlu1 %v432_v44, %s999_s24 }
  0x74   : > { %457 = vrot.lane.b32.xlu0 %v432_v44, %s998_s18 }
  0x77   : > { %495 = vrot.lane.b32.xlu1 %v1195_v42, %s999_s24 }
  0xca   : > { %v472_v45 = vpop.permute.xlu0 %471 }
  0xcb   : > { %v478_v52 = vsel %vm369_vm4, %v434_v19, %v472_v45 }
  0xcc   : > { %v486_v57 = vadd.f32 %v482_v50, %v478_v52 }
  0xcd   : > { %v490_v47 = vpop.permute.xlu1 %489 }
  0xce   : > { %v474_v48 = vpop.permute.xlu0 %473  ;;  %v497_v2 = vsel %vm370_vm5, %v433_v26, %v490_v47 }
  0xcf   : > { %v479_v12 = vsel %vm369_vm4, %v1181_v27, %v474_v48 }
  0xd1   : > { %v440_v49 = vpop.permute.xlu1 %439 }
  0xd2   : > { %v492_v51 = vpop.permute.xlu0 %491  ;;  %v448_v59 = vsel %vm370_vm5, %v430_v28, %v440_v49 }
  0xd3   : > { %v498_v55 = vsel %vm370_vm5, %v434_v19, %v492_v51  ;;  %v487_v19 = vadd.f32 %v483_v9, %v479_v12 }
  0xd4   : > { %v502_v61 = vadd.f32 %v498_v55, %v486_v57 }
  0xd5   : > { %v454_v53 = vpop.permute.xlu1 %453 }
  0xd6   : > { %v462_v56 = vsel %vm369_vm4, %v430_v28, %v454_v53  ;;  %v470_v58 = vpop.permute.xlu0 %469  ;;  %v510_v4 = vmul.f32 %v502_v61, %v502_v61 }
  0xd7   : > { %v477_v60 = vsel %vm369_vm4, %v433_v26, %v470_v58  ;;  %v466_v62 = vsub.f32 %v448_v59, %v462_v56  ;;  %v484_v26 = vmul.f32 2.0, %v1195_v42 }
  0xd8   : > { %v485_v63 = vadd.f32 %v481_v54, %v477_v60 }
  0xd9   : > { %v442_v0 = vpop.permute.xlu1 %441  ;;  %v506_v5 = vmul.f32 %v466_v62, %v466_v62 }
  0xda   : > { %v452_v1 = vpop.permute.xlu0 %451  ;;  %v501_v6 = vadd.f32 %v497_v2, %v485_v63  ;;  %v449_v18 = vsel %vm370_vm5, %v431_v35, %v442_v0 }
  0xdb   : > { %v461_v3 = vsel %vm369_vm4, %v429_v37, %v452_v1  ;;  %v514_v14 = vadd.f32 %v510_v4, %v506_v5 }
  0xdc   : > { %v509_v15 = vmul.f32 %v501_v6, %v501_v6 }
  0xdd   : > { %v438_v7 = vpop.permute.xlu1 %437  ;;  %v518_v24 = vadd.f32 1.6e-08, %v514_v14 }
  0xde   : > { %v447_v8 = vsel %vm370_vm5, %v429_v37, %v438_v7  ;;  %v456_v11 = vpop.permute.xlu0 %455 }
  0xdf   : > { %v465_v10 = vsub.f32 %v447_v8, %v461_v3  ;;  %v463_v13 = vsel %vm369_vm4, %v431_v35, %v456_v11  ;;  %vm530_vm7 = vcmp.eq.f32.partialorder %v518_v24, inf  ;;  %v533_v57 = vand.u32 2147483648, %v518_v24 }
  0xe0   : > { %v467_v21 = vsub.f32 %v449_v18, %v463_v13  ;;  %vm532_vm10 = vcmp.eq.f32.partialorder %v518_v24, 0.0 }
  0xe1   : > { %v505_v16 = vmul.f32 %v465_v10, %v465_v10  ;;  %v476_v17 = vpop.permute.xlu1 %475 }
  0xe2   : > { %v494_v22 = vpop.permute.xlu0 %493  ;;  %v480_v30 = vsel %vm369_vm4, %v1195_v42, %v476_v17  ;;  %v507_v31 = vmul.f32 %v467_v21, %v467_v21 }
  0xe3   : > { %v513_v20 = vadd.f32 %v509_v15, %v505_v16  ;;  %v499_v23 = vsel %vm370_vm5, %v1181_v27, %v494_v22  ;;  %v488_v35 = vadd.f32 %v484_v26, %v480_v30 }
  0xe4   : > { %v503_v28 = vadd.f32 %v499_v23, %v487_v19 }
  0xe5   : > { %v517_v25 = vadd.f32 1.6e-08, %v513_v20  ;;  %v444_v29 = vpop.permute.xlu1 %443 }
  0xe6   : > { %v511_v32 = vmul.f32 %v503_v28, %v503_v28  ;;  %v458_v33 = vpop.permute.xlu0 %457  ;;  %v450_v34 = vsel %vm370_vm5, %v432_v44, %v444_v29 }
  0xe7   : > { %815 = vrsqrt.f32 %v517_v25  ;;  %v464_v27 = vsel %vm369_vm4, %v432_v44, %v458_v33  ;;  %vm523_vm6 = vcmp.eq.f32.partialorder %v517_v25, inf  ;;  %v526_v46 = vand.u32 2147483648, %v517_v25 }
  0xe8   : > { %817 = vrsqrt.f32 %v518_v24  ;;  %v515_v36 = vadd.f32 %v511_v32, %v507_v31  ;;  %v468_v37 = vsub.f32 %v450_v34, %v464_v27  ;;  %vm525_vm9 = vcmp.eq.f32.partialorder %v517_v25, 0.0 }
  0xe9   : > { %v496_v38 = vpop.permute.xlu1 %495 }
  0xea   : > { %v500_v39 = vsel %vm370_vm5, %v1195_v42, %v496_v38  ;;  %v519_v40 = vadd.f32 1.6e-08, %v515_v36  ;;  %v508_v41 = vmul.f32 %v468_v37, %v468_v37 }
  0xeb   : > { %v504_v43 = vadd.f32 %v500_v39, %v488_v35 }
  0xec   : > { %819 = vrsqrt.f32 %v519_v40  ;;  %vm537_vm8 = vcmp.eq.f32.partialorder %v519_v40, inf  ;;  %v540_v58 = vand.u32 2147483648, %v519_v40  ;;  %vm539_vm11 = vcmp.eq.f32.partialorder %v519_v40, 0.0 }
  0xed   : > { %v512_v45 = vmul.f32 %v504_v43, %v504_v43 }
  0xef   : > { %v516_v47 = vadd.f32 %v512_v45, %v508_v41 }
  0xf1   : > { %v520_v48 = vadd.f32 1.6e-08, %v516_v47 }
  0xf3   : > { %821 = vrsqrt.f32 %v520_v48  ;;  %vm544_vm12 = vcmp.eq.f32.partialorder %v520_v48, inf  ;;  %v547_v0 = vand.u32 2147483648, %v520_v48  ;;  %vm546_vm13 = vcmp.eq.f32.partialorder %v520_v48, 0.0 }
  0xf4   : > { %v816_v49 = vpop.eup %815 }
  0xf5   : > { %v818_v44 = vpop.eup %817  ;;  %v522_v50 = vmul.f32 %v816_v49, %v517_v25 }
  0xf6   : > { %v529_v51 = vmul.f32 %v818_v44, %v518_v24 }
  0xf7   : > { %v524_v53 = vsel %vm523_vm6, %v517_v25, %v522_v50 }
  0xf8   : > { %v531_v42 = vsel %vm530_vm7, %v518_v24, %v529_v51  ;;  %v527_v56 = vsel %vm525_vm9, %v526_v46, %v524_v53 }
  0xf9   : > { %v820_v52 = vpop.eup %819  ;;  %v534_v60 = vsel %vm532_vm10, %v533_v57, %v531_v42 }
  0xfa   : > { %v536_v54 = vmul.f32 %v820_v52, %v519_v40  ;;  %v549_v63 = vadd.f32 %v534_v60, %v527_v56 }
  0xfc   : > { %v538_v55 = vsel %vm537_vm8, %v519_v40, %v536_v54 }
  0xfd   : > { %v541_v61 = vsel %vm539_vm11, %v540_v58, %v538_v55 }
  0xfe   : > { %v550_v2 = vadd.f32 %v549_v63, %v541_v61 }
 0x100   : > { %v822_v59 = vpop.eup %821 }
 0x101   : > { %v543_v62 = vmul.f32 %v822_v59, %v520_v48 }
 0x103   : > { %v545_v1 = vsel %vm544_vm12, %v520_v48, %v543_v62 }
 0x104   : > { %v548_v3 = vsel %vm546_vm13, %v547_v0, %v545_v1 }
 0x105   : > { %v551_v4 = vadd.f32 %v550_v2, %v548_v3 }
 0x107   : > { %556 = vst [vmem:[%s325_s30] sm:$0xff] %v551_v4 }
 0x108   : > { %920 = shalt.err (!%p917_p6)
}
 0x109   : > { %s921_s1 = scalar_lea.hbm %s577_s9, 128  ;;  %s925_s2 = scalar_lea.hbm %s1293_s3, 256 }
 0x10a   : > { %p922_p7 = scmp.ne.s32.totalorder %s577_s9, %s921_s1  ;;  %p926_p2 = scmp.lt.s32.totalorder %s577_s9, %s1293_s3 }
 0x10b   : > { %p927_p8 = scmp.lt.s32.totalorder %s925_s2, %s921_s1 }
 0x10c   : > { %p923_p10 = pnand %p922_p7, %p1076_p9 }
 0x10d   : > { %p928_p0 = por %p927_p8, %p926_p2 }
 0x10e   : > { %p924_p13 = pneg %p923_p10 }
 0x110   : > { %p929_p12 = pnand %p928_p0, %p924_p13 }
 0x112   : > { %932 = shalt.err (!%p929_p12)
}
 0x113   : > { %745 = dma.vmem_to_hbm [thread:$0]  (%p1076_p9), %s580_s10, 128, %s577_s9, %s565_s19  }
 0x114 PF: > { %s591_s26 = sand.u32 1, %s971_s12   ;;  %p1312_p1 = scmp.ge.s32.totalorder %s991_s17, 2 }
 0x115   : > { %s592_s16 = scalar_lea.sflag [#allocation4], %s591_s26 }
 0x116   : > { %p758_p3 = pnand %p1312_p1, %p1083_p11 }
 0x118   : > { %p759_p4 = pneg %p758_p3 }
 0x11a   : > { %966 = dma.done.wait (%p759_p4), %s592_s16, 128  }
 0x11b   : > { %968 = vsyncadd (%p759_p4), %s592_s16, 4294967168  ;;  %s22_s17 = sadd.s32 1, %s991_s17   ;;  %s1313_s7 = sld [smem:[#allocation14_spill]] }
 0x11c   : > { %p19_p5 = scmp.ge.s32.totalorder %s22_s17, 4   ;;  %s1314_s15 = sld [smem:[#allocation12_spill]] }
 0x11d   : > { %s1315_s16 = sld [smem:[#allocation13_spill]]  ;;  %s1316_s12 = smov %s975_s13 }
 0x11e   : > { %s1317_s13 = smov %s979_s14  ;;  %21 = sbr.rel (!%p19_p5) target bundleno = 11 (0xb), region = 109 }
 0x121   : > { %s1318_s14 = smov %s1313_s7 }
 0x123   :  { %597 = vsyncpa [#allocation3], 1 }
 0x124   :  { %599 = vsyncpa [#allocation3 + $0x1], 1 }
 0x125   :  { %600 = vsyncpa [#allocation6], 1 }
 0x126   :  { %602 = vsyncpa [#allocation6 + $0x1], 1 }
 0x127   :  { %603 = vsyncpa [#allocation4], 1 }
 0x128   :  { %605 = vsyncpa [#allocation4 + $0x1], 1 }

</bundles_post_ra>
